<compile_context>
chip_gen: v7x
topology: tpu7x:2x2x1
jax: 0.10.0
libtpu: 0.0.40
codegen_flags: <defaults>
</compile_context>

<pallas_src>
import jax
import jax.numpy as jnp
from jax.experimental import pallas as pl
from jax.experimental.pallas import tpu as pltpu


_LANE = 128        # f32 lane width
_MAX_TILE_N = 512  # cells (lanes) per grid step (vreg-pressure driven)


def _round_up(x, m):
    return ((x + m - 1) // m) * m


def _dnn_kernel(sc_ref,                  # SMEM prefetch: [dt]
                us_ref,                  # (2, T): row0=unsplice, row1=splice
                w1_ref, b1_ref,          # (h1, 2), (h1, 1)
                w2_ref, b2_ref,          # (h2, h1), (h2, 1)
                w3_ref, b3_ref,          # (3, h2), (3, 1)  rows=[alpha,beta,gamma]
                scale3_ref,              # (3, 1): [alpha0, beta0, gamma0]
                out_ref):                # (5, T): [up, sp, alphas, beta, gamma]
    us = us_ref[...]                     # (2, T)
    u = us[0:1, :]                       # (1, T)
    s = us[1:2, :]                       # (1, T)

    # l1: Linear(2, h1) on the MXU (K=2 contraction), bias + leaky_relu on VPU.
    h = jnp.dot(w1_ref[...], us, preferred_element_type=jnp.float32) + b1_ref[...]
    h = jnp.maximum(h, 0.01 * h)         # leaky_relu (slope 0.01), 2 VALU ops

    # l2: Linear(h1, h2) on the MXU.
    h = jnp.dot(w2_ref[...], h, preferred_element_type=jnp.float32) + b2_ref[...]
    h = jnp.maximum(h, 0.01 * h)

    # l3: Linear(h2, 3) + sigmoid (exp and reciprocal both go to the EUP).
    logit = jnp.dot(w3_ref[...], h, preferred_element_type=jnp.float32) + b3_ref[...]
    o = pl.reciprocal(1.0 + jnp.exp(-logit), approx=False)      # (3, T)

    # one packed (3,1)-column scale instead of three (1,T) row multiplies
    rates = o * scale3_ref[...]          # (3, T): rows [alphas, beta, gamma]
    alphas = rates[0:1, :]
    beta = rates[1:2, :]
    gamma = rates[2:3, :]

    dt = sc_ref[0]
    bu = beta * u
    up = u + (alphas - bu) * dt
    sp = s + (bu - gamma * s) * dt

    # single dense (5, T) store -> unmasked vst stream, no pad rows
    out_ref[...] = jnp.concatenate([up, sp, rates], axis=0)


def dnn_layer_forward(unsplice, splice, params, alpha0, beta0, gamma0, dt):
    """JAX/Pallas equivalent of DNN_layer.forward.

    unsplice, splice: (N,) float32
    params: (w1 (2,h1), b1 (h1,), w2 (h1,h2), b2 (h2,), w3 (h2,3), b3 (3,))
    Returns (unsplice_predict, splice_predict, alphas, beta, gamma), each (N,).
    """
    w1, b1, w2, b2, w3, b3 = params
    unsplice = jnp.asarray(unsplice, jnp.float32)
    splice = jnp.asarray(splice, jnp.float32)
    N = unsplice.shape[0]
    h1 = w1.shape[1]
    h2 = w2.shape[1]

    # cell axis -> lane axis; pad to a lane-aligned tile multiple.
    # NOTE: padded lanes (u=s=0) still produce nonzero sigmoid(b3)-driven
    # values in the output slab; they are sliced off below (never reduce
    # over padded lanes).
    n_pad = _round_up(max(N, _LANE), _LANE)
    tile_n = min(_MAX_TILE_N, n_pad)
    n_pad = _round_up(n_pad, tile_n)
    grid = (n_pad // tile_n,)

    us = jnp.stack([unsplice, splice], axis=0)          # (2, N)
    if n_pad != N:
        us = jnp.pad(us, ((0, 0), (0, n_pad - N)))

    # weights as (out, in) for the (feature, cell) compute; permute l3's
    # output neurons from torch order [beta, gamma, alpha] to [alpha, beta,
    # gamma] so the kernel's rate block maps 1:1 onto the output rows.
    perm = jnp.array([2, 0, 1], dtype=jnp.int32)
    w1t = jnp.asarray(w1, jnp.float32).T                # (h1, 2)
    w2t = jnp.asarray(w2, jnp.float32).T                # (h2, h1)
    w3t = jnp.asarray(w3, jnp.float32)[:, perm].T       # (3, h2)
    b1c = jnp.reshape(jnp.asarray(b1, jnp.float32), (h1, 1))
    b2c = jnp.reshape(jnp.asarray(b2, jnp.float32), (h2, 1))
    b3c = jnp.reshape(jnp.asarray(b3, jnp.float32)[perm], (3, 1))

    scale3 = jnp.array([[alpha0], [beta0], [gamma0]], dtype=jnp.float32)
    scalars = jnp.array([dt], dtype=jnp.float32)

    grid_spec = pltpu.PrefetchScalarGridSpec(
        num_scalar_prefetch=1,
        grid=grid,
        in_specs=[
            pl.BlockSpec((2, tile_n), lambda i, sc: (0, i)),   # unsplice/splice slab
            pl.BlockSpec((h1, 2),     lambda i, sc: (0, 0)),   # w1 (resident)
            pl.BlockSpec((h1, 1),     lambda i, sc: (0, 0)),   # b1 (resident)
            pl.BlockSpec((h2, h1),    lambda i, sc: (0, 0)),   # w2 (resident)
            pl.BlockSpec((h2, 1),     lambda i, sc: (0, 0)),   # b2 (resident)
            pl.BlockSpec((3, h2),     lambda i, sc: (0, 0)),   # w3 (resident)
            pl.BlockSpec((3, 1),      lambda i, sc: (0, 0)),   # b3 (resident)
            pl.BlockSpec((3, 1),      lambda i, sc: (0, 0)),   # [alpha0,beta0,gamma0]
        ],
        out_specs=pl.BlockSpec((5, tile_n), lambda i, sc: (0, i)),
    )

    out = pl.pallas_call(
        _dnn_kernel,
        out_shape=jax.ShapeDtypeStruct((5, n_pad), jnp.float32),
        grid_spec=grid_spec,
        compiler_params=pltpu.CompilerParams(
            dimension_semantics=("parallel",)),
    )(scalars, us, w1t, b1c, w2t, b2c, w3t, b3c, scale3)

    return (out[0, :N], out[1, :N], out[2, :N], out[3, :N], out[4, :N])


def _init_params(key, h1, h2):
    """Deterministic init mimicking nn.Linear (uniform +- 1/sqrt(fan_in))."""
    ks = jax.random.split(key, 6)

    def lin(kw, kb, fan_in, fan_out):
        bound = 1.0 / jnp.sqrt(jnp.float32(fan_in))
        w = jax.random.uniform(kw, (fan_in, fan_out), jnp.float32,
                               -bound, bound)
        b = jax.random.uniform(kb, (fan_out,), jnp.float32, -bound, bound)
        return w, b

    w1, b1 = lin(ks[0], ks[1], 2, h1)
    w2, b2 = lin(ks[2], ks[3], h1, h2)
    w3, b3 = lin(ks[4], ks[5], h2, 3)
    return (w1, b1, w2, b2, w3, b3)


def _reference(unsplice, splice, params, alpha0, beta0, gamma0, dt):
    w1, b1, w2, b2, w3, b3 = params
    x = jnp.stack([unsplice, splice], axis=1)
    h = jax.nn.leaky_relu(x @ w1 + b1, 0.01)
    h = jax.nn.leaky_relu(h @ w2 + b2, 0.01)
    o = jax.nn.sigmoid(h @ w3 + b3)
    beta = o[:, 0] * beta0
    gamma = o[:, 1] * gamma0
    alphas = o[:, 2] * alpha0
    up = unsplice + (alphas - beta * unsplice) * dt
    sp = splice + (beta * unsplice - gamma * splice) * dt
    return up, sp, alphas, beta, gamma


# TODO(synk): DNN_layer.save / DNN_layer.load (torch checkpointing) have no
# kernel equivalent and are intentionally omitted.

if __name__ == "__main__":
    key = jax.random.PRNGKey(0)
    k_u, k_s, k_p = jax.random.split(key, 3)

    N, h1, h2 = 256, 32, 32
    unsplice = jax.random.uniform(k_u, (N,), jnp.float32, 0.0, 1.0)
    splice = jax.random.uniform(k_s, (N,), jnp.float32, 0.0, 1.0)
    params = _init_params(k_p, h1, h2)

    alpha0, beta0, gamma0, dt = 2.0, 1.5, 0.8, 0.5

    outs = dnn_layer_forward(unsplice, splice, params,
                             alpha0, beta0, gamma0, dt)
    outs = jax.block_until_ready(outs)

    refs = _reference(unsplice, splice, params, alpha0, beta0, gamma0, dt)
    for got, want in zip(outs, refs):
        assert got.shape == want.shape
        assert jnp.allclose(got, want, atol=1e-5, rtol=1e-5)

    print("KERNEL_OK")
</pallas_src>

<mosaic_0001>
module attributes {stable_mosaic.version = 11 : i64} {
  func.func @_dnn_kernel(%arg0: i32, %arg1: memref<1xf32, #tpu.memory_space<smem>>, %arg2: memref<2x256xf32, #tpu.memory_space<vmem>>, %arg3: memref<32x2xf32, #tpu.memory_space<vmem>>, %arg4: memref<32x1xf32, #tpu.memory_space<vmem>>, %arg5: memref<32x32xf32, #tpu.memory_space<vmem>>, %arg6: memref<32x1xf32, #tpu.memory_space<vmem>>, %arg7: memref<3x32xf32, #tpu.memory_space<vmem>>, %arg8: memref<3x1xf32, #tpu.memory_space<vmem>>, %arg9: memref<3x1xf32, #tpu.memory_space<vmem>>, %arg10: memref<5x256xf32, #tpu.memory_space<vmem>>) attributes {dimension_semantics = [#tpu.dimension_semantics<parallel>], iteration_bounds = array<i64: 1>, scalar_prefetch = 1 : i64, scratch_operands = 0 : i64, tpu.core_type = #tpu.core_type<tc>, window_params = [{transform_indices = @transform_0, window_bounds = array<i64: 2, 256>}, {pipeline_mode = #tpu.pipeline_mode<synchronous>, transform_indices = @transform_1, window_bounds = array<i64: 32, 2>}, {pipeline_mode = #tpu.pipeline_mode<synchronous>, transform_indices = @transform_2, window_bounds = array<i64: 32, 1>}, {pipeline_mode = #tpu.pipeline_mode<synchronous>, transform_indices = @transform_3, window_bounds = array<i64: 32, 32>}, {pipeline_mode = #tpu.pipeline_mode<synchronous>, transform_indices = @transform_4, window_bounds = array<i64: 32, 1>}, {pipeline_mode = #tpu.pipeline_mode<synchronous>, transform_indices = @transform_5, window_bounds = array<i64: 3, 32>}, {pipeline_mode = #tpu.pipeline_mode<synchronous>, transform_indices = @transform_6, window_bounds = array<i64: 3, 1>}, {pipeline_mode = #tpu.pipeline_mode<synchronous>, transform_indices = @transform_7, window_bounds = array<i64: 3, 1>}, {transform_indices = @transform_8, window_bounds = array<i64: 5, 256>}]} {
    %c0 = arith.constant 0 : index
    %c0_0 = arith.constant 0 : index
    %0 = vector.load %arg2[%c0, %c0_0] : memref<2x256xf32, #tpu.memory_space<vmem>>, vector<2x256xf32>
    %1 = vector.extract_strided_slice %0 {offsets = [0, 0], sizes = [1, 256], strides = [1, 1]} : vector<2x256xf32> to vector<1x256xf32>
    %2 = vector.extract_strided_slice %0 {offsets = [1, 0], sizes = [1, 256], strides = [1, 1]} : vector<2x256xf32> to vector<1x256xf32>
    %c0_1 = arith.constant 0 : index
    %c0_2 = arith.constant 0 : index
    %3 = vector.load %arg3[%c0_1, %c0_2] : memref<32x2xf32, #tpu.memory_space<vmem>>, vector<32x2xf32>
    %cst = arith.constant dense<0.000000e+00> : vector<32x256xf32>
    %4 = tpu.matmul %3, %0, %cst {dimension_numbers = #tpu.dot_dimension_numbers<[1], [0], [0], [1], [0, 0, 1, 1], [], []>} : vector<32x2xf32>, vector<2x256xf32>, vector<32x256xf32> -> vector<32x256xf32>
    %c0_3 = arith.constant 0 : index
    %c0_4 = arith.constant 0 : index
    %5 = vector.load %arg4[%c0_3, %c0_4] : memref<32x1xf32, #tpu.memory_space<vmem>>, vector<32x1xf32>
    %6 = vector.broadcast %5 : vector<32x1xf32> to vector<32x256xf32>
    %7 = arith.addf %4, %6 : vector<32x256xf32>
    %cst_5 = arith.constant 0.00999999977 : f32
    %8 = vector.broadcast %cst_5 : f32 to vector<32x256xf32>
    %9 = arith.mulf %8, %7 : vector<32x256xf32>
    %10 = arith.maximumf %7, %9 : vector<32x256xf32>
    %c0_6 = arith.constant 0 : index
    %c0_7 = arith.constant 0 : index
    %11 = vector.load %arg5[%c0_6, %c0_7] : memref<32x32xf32, #tpu.memory_space<vmem>>, vector<32x32xf32>
    %cst_8 = arith.constant dense<0.000000e+00> : vector<32x256xf32>
    %12 = tpu.matmul %11, %10, %cst_8 {dimension_numbers = #tpu.dot_dimension_numbers<[1], [0], [0], [1], [0, 0, 1, 1], [], []>} : vector<32x32xf32>, vector<32x256xf32>, vector<32x256xf32> -> vector<32x256xf32>
    %c0_9 = arith.constant 0 : index
    %c0_10 = arith.constant 0 : index
    %13 = vector.load %arg6[%c0_9, %c0_10] : memref<32x1xf32, #tpu.memory_space<vmem>>, vector<32x1xf32>
    %14 = vector.broadcast %13 : vector<32x1xf32> to vector<32x256xf32>
    %15 = arith.addf %12, %14 : vector<32x256xf32>
    %cst_11 = arith.constant 0.00999999977 : f32
    %16 = vector.broadcast %cst_11 : f32 to vector<32x256xf32>
    %17 = arith.mulf %16, %15 : vector<32x256xf32>
    %18 = arith.maximumf %15, %17 : vector<32x256xf32>
    %c0_12 = arith.constant 0 : index
    %c0_13 = arith.constant 0 : index
    %19 = vector.load %arg7[%c0_12, %c0_13] : memref<3x32xf32, #tpu.memory_space<vmem>>, vector<3x32xf32>
    %cst_14 = arith.constant dense<0.000000e+00> : vector<3x256xf32>
    %20 = tpu.matmul %19, %18, %cst_14 {dimension_numbers = #tpu.dot_dimension_numbers<[1], [0], [0], [1], [0, 0, 1, 1], [], []>} : vector<3x32xf32>, vector<32x256xf32>, vector<3x256xf32> -> vector<3x256xf32>
    %c0_15 = arith.constant 0 : index
    %c0_16 = arith.constant 0 : index
    %21 = vector.load %arg8[%c0_15, %c0_16] : memref<3x1xf32, #tpu.memory_space<vmem>>, vector<3x1xf32>
    %22 = vector.broadcast %21 : vector<3x1xf32> to vector<3x256xf32>
    %23 = arith.addf %20, %22 : vector<3x256xf32>
    %cst_17 = arith.constant 0.000000e+00 : f32
    %24 = vector.broadcast %cst_17 : f32 to vector<3x256xf32>
    %25 = arith.subf %24, %23 : vector<3x256xf32>
    %26 = math.exp %25 : vector<3x256xf32>
    %cst_18 = arith.constant 1.000000e+00 : f32
    %27 = vector.broadcast %cst_18 : f32 to vector<3x256xf32>
    %28 = arith.addf %27, %26 : vector<3x256xf32>
    %29 = tpu.reciprocal %28 : vector<3x256xf32> -> vector<3x256xf32>
    %c0_19 = arith.constant 0 : index
    %c0_20 = arith.constant 0 : index
    %30 = vector.load %arg9[%c0_19, %c0_20] : memref<3x1xf32, #tpu.memory_space<vmem>>, vector<3x1xf32>
    %31 = vector.broadcast %30 : vector<3x1xf32> to vector<3x256xf32>
    %32 = arith.mulf %29, %31 : vector<3x256xf32>
    %33 = vector.extract_strided_slice %32 {offsets = [0, 0], sizes = [1, 256], strides = [1, 1]} : vector<3x256xf32> to vector<1x256xf32>
    %34 = vector.extract_strided_slice %32 {offsets = [1, 0], sizes = [1, 256], strides = [1, 1]} : vector<3x256xf32> to vector<1x256xf32>
    %35 = vector.extract_strided_slice %32 {offsets = [2, 0], sizes = [1, 256], strides = [1, 1]} : vector<3x256xf32> to vector<1x256xf32>
    %c0_21 = arith.constant 0 : index
    %36 = memref.load %arg1[%c0_21] : memref<1xf32, #tpu.memory_space<smem>>
    %37 = arith.mulf %34, %1 : vector<1x256xf32>
    %38 = arith.subf %33, %37 : vector<1x256xf32>
    %39 = vector.broadcast %36 : f32 to vector<1x256xf32>
    %40 = arith.mulf %38, %39 : vector<1x256xf32>
    %41 = arith.addf %1, %40 : vector<1x256xf32>
    %42 = arith.mulf %35, %2 : vector<1x256xf32>
    %43 = arith.subf %37, %42 : vector<1x256xf32>
    %44 = vector.broadcast %36 : f32 to vector<1x256xf32>
    %45 = arith.mulf %43, %44 : vector<1x256xf32>
    %46 = arith.addf %2, %45 : vector<1x256xf32>
    %47 = tpu.concatenate %41, %46, %32 in 0 : vector<1x256xf32>, vector<1x256xf32>, vector<3x256xf32> -> vector<5x256xf32>
    %c0_22 = arith.constant 0 : index
    %c0_23 = arith.constant 0 : index
    %48 = vector.load %arg10[%c0_22, %c0_23] : memref<5x256xf32, #tpu.memory_space<vmem>>, vector<5x256xf32>
    tpu.vector_store %arg10[%c0_22, %c0_23], %47 {strides = array<i32>} : memref<5x256xf32, #tpu.memory_space<vmem>>, vector<5x256xf32>,
    return
  }
  func.func @transform_0(%arg0: i32, %arg1: memref<1xf32, #tpu.memory_space<smem>>) -> (i32, i32) {
    %c0_i32 = arith.constant 0 : i32
    %c0_i32_0 = arith.constant 0 : i32
    return %c0_i32, %arg0 : i32, i32
  }
  func.func @transform_1(%arg0: i32, %arg1: memref<1xf32, #tpu.memory_space<smem>>) -> (i32, i32) {
    %c0_i32 = arith.constant 0 : i32
    %c0_i32_0 = arith.constant 0 : i32
    %c0_i32_1 = arith.constant 0 : i32
    return %c0_i32, %c0_i32_0 : i32, i32
  }
  func.func @transform_2(%arg0: i32, %arg1: memref<1xf32, #tpu.memory_space<smem>>) -> (i32, i32) {
    %c0_i32 = arith.constant 0 : i32
    %c0_i32_0 = arith.constant 0 : i32
    %c0_i32_1 = arith.constant 0 : i32
    return %c0_i32, %c0_i32_0 : i32, i32
  }
  func.func @transform_3(%arg0: i32, %arg1: memref<1xf32, #tpu.memory_space<smem>>) -> (i32, i32) {
    %c0_i32 = arith.constant 0 : i32
    %c0_i32_0 = arith.constant 0 : i32
    %c0_i32_1 = arith.constant 0 : i32
    return %c0_i32, %c0_i32_0 : i32, i32
  }
  func.func @transform_4(%arg0: i32, %arg1: memref<1xf32, #tpu.memory_space<smem>>) -> (i32, i32) {
    %c0_i32 = arith.constant 0 : i32
    %c0_i32_0 = arith.constant 0 : i32
    %c0_i32_1 = arith.constant 0 : i32
    return %c0_i32, %c0_i32_0 : i32, i32
  }
  func.func @transform_5(%arg0: i32, %arg1: memref<1xf32, #tpu.memory_space<smem>>) -> (i32, i32) {
    %c0_i32 = arith.constant 0 : i32
    %c0_i32_0 = arith.constant 0 : i32
    %c0_i32_1 = arith.constant 0 : i32
    return %c0_i32, %c0_i32_0 : i32, i32
  }
  func.func @transform_6(%arg0: i32, %arg1: memref<1xf32, #tpu.memory_space<smem>>) -> (i32, i32) {
    %c0_i32 = arith.constant 0 : i32
    %c0_i32_0 = arith.constant 0 : i32
    %c0_i32_1 = arith.constant 0 : i32
    return %c0_i32, %c0_i32_0 : i32, i32
  }
  func.func @transform_7(%arg0: i32, %arg1: memref<1xf32, #tpu.memory_space<smem>>) -> (i32, i32) {
    %c0_i32 = arith.constant 0 : i32
    %c0_i32_0 = arith.constant 0 : i32
    %c0_i32_1 = arith.constant 0 : i32
    return %c0_i32, %c0_i32_0 : i32, i32
  }
  func.func @transform_8(%arg0: i32, %arg1: memref<1xf32, #tpu.memory_space<smem>>) -> (i32, i32) {
    %c0_i32 = arith.constant 0 : i32
    %c0_i32_0 = arith.constant 0 : i32
    return %c0_i32, %arg0 : i32, i32
  }
}

</mosaic_0001>

<bundles_post_ra>
// kernel: tpu_custom_call.1
= control target key start
LH: loop header
LB: loop body
LE: loop exit
PB: predicated region body
PF: predicated region fallthrough
CT: control target
= control target key end

     0   :  { %v65_v0 = vlaneseq  ;;  %v622_v1 = vmov 1983009808   ;;  %v623_v3 = vmov 0.0   ;;  %v624_v5 = vmov 0   ;;  %s794_s0 = inlined_call_operand.<no memory space> [shape: f32[1], index: 0, kind: input, shape index: {}]   ;;  %s795_s1 = inlined_call_operand.vmem [shape: f32[2,256], index: 1, kind: input, shape index: {}]   ;;  %s796_s2 = inlined_call_operand.vmem [shape: f32[32,2], index: 2, kind: input, shape index: {}]   ;;  %s797_s3 = inlined_call_operand.vmem [shape: f32[32,1], index: 3, kind: input, shape index: {}]   ;;  %s798_s4 = inlined_call_operand.vmem [shape: f32[32,32], index: 4, kind: input, shape index: {}]   ;;  %s799_s5 = inlined_call_operand.vmem [shape: f32[32,1], index: 5, kind: input, shape index: {}]   ;;  %s800_s6 = inlined_call_operand.vmem [shape: f32[3,32], index: 6, kind: input, shape index: {}]   ;;  %s801_s7 = inlined_call_operand.vmem [shape: f32[3,1], index: 7, kind: input, shape index: {}]   ;;  %s802_s8 = inlined_call_operand.vmem [shape: f32[3,1], index: 8, kind: input, shape index: {}]   ;;  %s803_s9 = inlined_call_operand.hbm [shape: f32[5,256], index: 9, kind: output, shape index: {}]  }
   0x1   :  { %v63_v2 = vunpack.c.l.s4 %v622_v1  ;;  %152 = vmatprep.mubr.f32.mxu0 %v623_v3  ;;  %298 = vmatprep.mubr.f32.mxu1 %v623_v3  ;;  %v37_v6 = vld [vmem:[%s797_s3] sm:$0xff]  ;;  %v39_v7 = vld [vmem:[%s797_s3 + $0x10] sm:$0xff]  ;;  %v38_v10 = vld [vmem:[%s797_s3 + $0x8] sm:$0xff] }
   0x2   :  { %v678_v4 = vshrl.u32 %v65_v0, 7  ;;  %588 = vset.pattern.permute.xlu0 %v624_v5  ;;  %589 = vset.pattern.permute.xlu1 %v624_v5  ;;  %v689_v9 = vld [vmem:[%s795_s1] sm:$0xf]  ;;  %v40_v11 = vld [vmem:[%s797_s3 + $0x18] sm:$0xff] }
   0x3   :  { %v64_v8 = vunpack.c.0.s8 %v63_v2  ;;  %43 = vperm.xlu0 %588, %v37_v6   ;;  %53 = vperm.xlu1 %589, %v39_v7  }
   0x5   :  { %v698_v12 = vsub.s32 %v64_v8, %v678_v4 }
   0x6   :  { %15 = vsyncpa [#allocation5], 0  ;;  %vm83_vm0 = vcmask 1041408   ;;  %v197_v14 = vld [vmem:[%s799_s5] sm:$0xff]  ;;  %v198_v16 = vld [vmem:[%s799_s5 + $0x8] sm:$0xff]  ;;  %vm70_vm1 = vcmask 15360  }
   0x7   :  { %v68_v13 = vrot.slane %v689_v9, %v698_v12  ;;  %48 = vperm.xlu0 %588, %v38_v10   ;;  %58 = vperm.xlu1 %589, %v40_v11   ;;  %v33_v17 = vld [vmem:[%s796_s2] sm:$0xff]  ;;  %v199_v18 = vld [vmem:[%s799_s5 + $0x10] sm:$0xff]  ;;  %v200_v19 = vld [vmem:[%s799_s5 + $0x18] sm:$0xff]  ;;  %vm221_vm2 = vcmask 261120   ;;  %vm536_vm3 = vcmask 1040384  }
   0x8   :  { %v34_v20 = vld [vmem:[%s796_s2 + $0x8] sm:$0xff]  ;;  %v340_v21 = vld [vmem:[%s801_s7] sm:$0x7]  ;;  %v35_v23 = vld [vmem:[%s796_s2 + $0x10] sm:$0xff] }
   0x9   :  { %v69_v15 = vcombine.high %v68_v13, %v68_v13  ;;  %v430_v22 = vld [vmem:[%s802_s8] sm:$0x7]  ;;  %v36_v24 = vld [vmem:[%s796_s2 + $0x18] sm:$0xff]  ;;  %v194_v2 = vld [vmem:[%s798_s4 + $0x8] sm:$0xff] }
   0xa   :  { %v193_v1 = vld [vmem:[%s798_s4] sm:$0xff]  ;;  %v195_v5 = vld [vmem:[%s798_s4 + $0x10] sm:$0xff]  ;;  %v196_v6 = vld [vmem:[%s798_s4 + $0x18] sm:$0xff] }
   0xb   :  { %557 = vmatprep.subr.msk.mxu0 %vm83_vm0, %v69_v15  ;;  %203 = vperm.xlu0 %588, %v197_v14  }
   0xc   :  { %558 = vmatpush1.msk.msra.mxu0 %vm83_vm0, %v68_v13  ;;  %208 = vperm.xlu1 %589, %v198_v16  }
   0xd   :  { %559 = vmatmul.mubr.msk.f32.vlgmr.msra.gmra.mrb[0].mxu0 %vm70_vm1, %v33_v17 }
   0xe   :  { %158 = vmatprep.mubr.f32.mxu0 %v623_v3 }
   0xf   :  { %213 = vperm.xlu0 %588, %v199_v18  }
  0x10   :  { %218 = vperm.xlu1 %589, %v200_v19  }
  0x11   :  { %560 = vmatmul.mubr.msk.f32.gmra.mrb[2].mxu0 %vm70_vm1, %v34_v20 }
  0x12   :  { %164 = vmatprep.mubr.f32.mxu0 %v623_v3 }
  0x13   :  { %343 = vperm.xlu0 %588, %v340_v21  }
  0x14   :  { %433 = vperm.xlu1 %589, %v430_v22  }
  0x15   :  { %561 = vmatmul.mubr.msk.f32.gmra.mrb[4].mxu0 %vm70_vm1, %v35_v23 }
  0x16   :  { %170 = vmatprep.mubr.f32.mxu0 %v623_v3 }
  0x19   :  { %562 = vmatmul.mubr.msk.f32.gmra.mrb[6].mxu0 %vm70_vm1, %v36_v24 }
  0x1a   :  { %413 = vmatprep.mubr.f32.mxu0 %v623_v3 }
  0x82   :  { %v44_v25 = vpop.permute.xlu0 %43  ;;  %v54_v35 = vpop.permute.xlu1 %53 }
  0x86   :  { %v49_v30 = vpop.permute.xlu0 %48  ;;  %v59_v49 = vpop.permute.xlu1 %58 }
  0x8a   :  { %v204_v7 = vpop.permute.xlu0 %203 }
  0x8b   :  { %v209_v14 = vpop.permute.xlu1 %208 }
  0xe0   :  { %v154_v26 = vpop.f32.mrb[0].mxu0 }
  0xe1   :  { %v155_v27 = vadd.f32 %v154_v26, %v44_v25  ;;  %v156_v28 = vpop.f32.mrb[1].mxu0 }
  0xe2   :  { %v157_v29 = vadd.f32 %v156_v28, %v44_v25 }
  0xe3   :  { %v177_v32 = vmul.f32 0.01, %v155_v27 }
  0xe4   :  { %v160_v31 = vpop.f32.mrb[2].mxu0  ;;  %v178_v36 = vmul.f32 0.01, %v157_v29 }
  0xe5   :  { %v161_v33 = vadd.f32 %v160_v31, %v49_v30  ;;  %v162_v34 = vpop.f32.mrb[3].mxu0  ;;  %v185_v41 = vmax.f32 %v155_v27, %v177_v32  ;;  %v219_v32 = vpop.permute.xlu1 %218 }
  0xe6   :  { %v163_v37 = vadd.f32 %v162_v34, %v49_v30  ;;  %v186_v46 = vmax.f32 %v157_v29, %v178_v36 }
  0xe7   :  { %v179_v38 = vmul.f32 0.01, %v161_v33 }
  0xe8   :  { %v180_v39 = vmul.f32 0.01, %v163_v37  ;;  %v166_v40 = vpop.f32.mrb[4].mxu0 }
  0xe9   :  { %v187_v42 = vmax.f32 %v161_v33, %v179_v38  ;;  %v167_v43 = vadd.f32 %v166_v40, %v54_v35  ;;  %v168_v44 = vpop.f32.mrb[5].mxu0 }
  0xea   :  { %v169_v45 = vadd.f32 %v168_v44, %v54_v35  ;;  %v188_v47 = vmax.f32 %v163_v37, %v180_v39 }
  0xeb   :  { %v570_v48 = vpack.c.bf16 %v187_v42, %v185_v41  ;;  %v181_v52 = vmul.f32 0.01, %v167_v43 }
  0xec   :  { %v172_v50 = vpop.f32.mrb[6].mxu0  ;;  %v568_v51 = vpack.c.bf16 %v188_v47, %v186_v46  ;;  %v182_v55 = vmul.f32 0.01, %v169_v45 }
  0xed   :  { %v173_v53 = vadd.f32 %v172_v50, %v59_v49  ;;  %v174_v54 = vpop.f32.mrb[7].mxu0  ;;  %v189_v59 = vmax.f32 %v167_v43, %v181_v52 }
  0xee   :  { %v175_v56 = vadd.f32 %v174_v54, %v59_v49  ;;  %569 = vmatprep.subr.bf16.mxu1 %v568_v51  ;;  %v190_v61 = vmax.f32 %v169_v45, %v182_v55 }
  0xef   :  { %v183_v57 = vmul.f32 0.01, %v173_v53  ;;  %571 = vmatpush1.bf16.msra.mxu1 %v570_v48  ;;  %v339_v48 = vld [vmem:[%s800_s6] sm:$0x7] }
  0xf0   :  { %v184_v58 = vmul.f32 0.01, %v175_v56 }
  0xf1   :  { %v191_v60 = vmax.f32 %v173_v53, %v183_v57 }
  0xf2   :  { %v192_v62 = vmax.f32 %v175_v56, %v184_v58 }
  0xf3   :  { %v574_v63 = vpack.c.bf16 %v191_v60, %v189_v59 }
  0xf4   :  { %v572_v0 = vpack.c.bf16 %v192_v62, %v190_v61  ;;  %v441_v62 = vsub.s32 0, %v678_v4 }
  0xf6   :  { %573 = vmatprep.subr.bf16.mxu1 %v572_v0  ;;  %v445_v0 = vsub.s32 2, %v678_v4 }
  0xf7   :  { %575 = vmatpush1.bf16.msra.mxu1 %v574_v63  ;;  %v476_v63 = vsub.s32 1, %v678_v4 }
  0xfa   :  { %563 = vmatmul.mubr.msk.f32.vlgmr.msra.gmra.mrb[0].mxu1 %vm221_vm2, %v193_v1  ;;  %v480_v1 = vsub.s32 3, %v678_v4 }
  0xfb   :  { %304 = vmatprep.mubr.f32.mxu1 %v623_v3 }
  0xfe   :  { %564 = vmatmul.mubr.msk.f32.gmra.mrb[2].mxu1 %vm221_vm2, %v194_v2  ;;  %v442_v2 = vrot.slane %v689_v9, %v441_v62 }
  0xff   :  { %310 = vmatprep.mubr.f32.mxu1 %v623_v3 }
 0x102   :  { %565 = vmatmul.mubr.msk.f32.gmra.mrb[4].mxu1 %vm221_vm2, %v195_v5  ;;  %v477_v5 = vrot.slane %v689_v9, %v476_v63 }
 0x103   :  { %316 = vmatprep.mubr.f32.mxu1 %v623_v3  ;;  %v214_v3 = vpop.permute.xlu0 %213 }
 0x106   :  { %566 = vmatmul.mubr.msk.f32.gmra.mrb[6].mxu1 %vm221_vm2, %v196_v6 }
 0x107   :  { %v344_v49 = vpop.permute.xlu0 %343 }
 0x1cd   :  { %v300_v8 = vpop.f32.mrb[0].mxu1 }
 0x1ce   :  { %v301_v10 = vadd.f32 %v300_v8, %v204_v7  ;;  %v302_v11 = vpop.f32.mrb[1].mxu1  ;;  %v446_v8 = vrot.slane %v689_v9, %v445_v0 }
 0x1cf   :  { %v303_v13 = vadd.f32 %v302_v11, %v204_v7  ;;  %v434_v7 = vpop.permute.xlu1 %433 }
 0x1d0   :  { %v323_v16 = vmul.f32 0.01, %v301_v10 }
 0x1d1   :  { %v306_v15 = vpop.f32.mrb[2].mxu1  ;;  %v324_v19 = vmul.f32 0.01, %v303_v13 }
 0x1d2   :  { %v307_v17 = vadd.f32 %v306_v15, %v209_v14  ;;  %v308_v18 = vpop.f32.mrb[3].mxu1  ;;  %v331_v24 = vmax.f32 %v301_v10, %v323_v16  ;;  %v481_v10 = vrot.slane %v689_v9, %v480_v1 }
 0x1d3   :  { %v309_v20 = vadd.f32 %v308_v18, %v209_v14  ;;  %v332_v28 = vmax.f32 %v303_v13, %v324_v19 }
 0x1d4   :  { %v325_v21 = vmul.f32 0.01, %v307_v17 }
 0x1d5   :  { %v326_v22 = vmul.f32 0.01, %v309_v20  ;;  %v312_v23 = vpop.f32.mrb[4].mxu1 }
 0x1d6   :  { %v333_v25 = vmax.f32 %v307_v17, %v325_v21  ;;  %v313_v26 = vadd.f32 %v312_v23, %v214_v3  ;;  %v314_v27 = vpop.f32.mrb[5].mxu1  ;;  %v459_v21 = vstv %s794_s0  ;;  %s625_s0 = smov [#allocation4]  }
 0x1d7   :  { %v334_v29 = vmax.f32 %v309_v20, %v326_v22  ;;  %v315_v30 = vadd.f32 %v314_v27, %v214_v3  ;;  %s549_s21 = sshll.u32 %s625_s0, 4  ;;  %s550_s21 = int_to_ptr.vmem [resolvable:$true] %s549_s21 }
 0x1d8   :  { %v578_v31 = vpack.c.bf16 %v333_v25, %v331_v24  ;;  %v327_v35 = vmul.f32 0.01, %v313_v26  ;;  %s598_s3 = scalar_lea.vmem %s550_s21, 256  ;;  %p603_p1 = scmp.lt.s32.totalorder %s550_s21, %s550_s21 }
 0x1d9   :  { %v318_v33 = vpop.f32.mrb[6].mxu1  ;;  %v576_v34 = vpack.c.bf16 %v334_v29, %v332_v28  ;;  %v328_v38 = vmul.f32 0.01, %v315_v30  ;;  %p599_p0 = scmp.ne.s32.totalorder %s550_s21, %s598_s3  ;;  %p604_p2 = scmp.lt.s32.totalorder %s598_s3, %s598_s3 }
 0x1da   :  { %v319_v36 = vadd.f32 %v318_v33, %v219_v32  ;;  %v320_v37 = vpop.f32.mrb[7].mxu1  ;;  %v335_v42 = vmax.f32 %v313_v26, %v327_v35 }
 0x1db   :  { %v321_v39 = vadd.f32 %v320_v37, %v219_v32  ;;  %577 = vmatprep.subr.bf16.mxu0 %v576_v34  ;;  %v336_v44 = vmax.f32 %v315_v30, %v328_v38  ;;  %p605_p3 = por %p604_p2, %p603_p1 }
 0x1dc   :  { %v329_v40 = vmul.f32 0.01, %v319_v36  ;;  %579 = vmatpush1.bf16.msra.mxu0 %v578_v31 }
 0x1dd   :  { %v330_v41 = vmul.f32 0.01, %v321_v39  ;;  %p606_p4 = pnand %p605_p3, %p599_p0 }
 0x1de   :  { %v337_v43 = vmax.f32 %v319_v36, %v329_v40 }
 0x1df   :  { %v338_v45 = vmax.f32 %v321_v39, %v330_v41 }
 0x1e0   :  { %v582_v46 = vpack.c.bf16 %v337_v43, %v335_v42 }
 0x1e1   :  { %v580_v47 = vpack.c.bf16 %v338_v45, %v336_v44 }
 0x1e3   :  { %581 = vmatprep.subr.bf16.mxu0 %v580_v47 }
 0x1e4   :  { %583 = vmatpush1.bf16.msra.mxu0 %v582_v46 }
 0x1e7   :  { %567 = vmatmul.mubr.msk.f32.vlgmr.msra.gmra.mrb[8].mxu0 %vm221_vm2, %v339_v48 }
 0x2ba   :  { %v415_v50 = vpop.f32.mrb[8].mxu0 }
 0x2bb   :  { %v416_v51 = vadd.f32 %v415_v50, %v344_v49  ;;  %v417_v52 = vpop.f32.mrb[9].mxu0 }
 0x2bc   :  { %v418_v53 = vadd.f32 %v417_v52, %v344_v49 }
 0x2bd   :  { %v420_v54 = vsub.f32 0.0, %v416_v51 }
 0x2be   :  { %v421_v55 = vsub.f32 0.0, %v418_v53 }
 0x2bf   :  { %v422_v56 = vmul.f32 1.442695, %v420_v54 }
 0x2c0   :  { %v424_v57 = vmul.f32 1.442695, %v421_v55 }
 0x2c1   :  { %590 = vpow2.f32 %v422_v56 }
 0x2c2   :  { %592 = vpow2.f32 %v424_v57 }
 0x2cb   :  { %v591_v58 = vpop.eup %590 }
 0x2cc   :  { %v593_v59 = vpop.eup %592  ;;  %v426_v60 = vadd.f32 1.0, %v591_v58 }
 0x2cd   :  { %v427_v61 = vadd.f32 1.0, %v593_v59 }
 0x2ce   :  { %594 = vrcp.f32 %v426_v60 }
 0x2cf   :  { %596 = vrcp.f32 %v427_v61 }
 0x2d8   :  { %v595_v6 = vpop.eup %594 }
 0x2d9   :  { %v597_v11 = vpop.eup %596  ;;  %v436_v13 = vmul.f32 %v595_v6, %v434_v7 }
 0x2da   :  { %v437_v14 = vmul.f32 %v597_v11, %v434_v7 }
 0x2db   :  { %v449_v15 = vmul.f32 %v442_v2, %v436_v13  ;;  %v484_v16 = vmul.f32 %v477_v5, %v436_v13  ;;  %v532_v40 = vrot.slane %v436_v13, 6 }
 0x2dc   :  { %v450_v17 = vmul.f32 %v446_v8, %v437_v14  ;;  %v485_v18 = vmul.f32 %v481_v10, %v437_v14  ;;  %v533_v41 = vrot.slane %v437_v14, 6 }
 0x2dd   :  { %v453_v19 = vrot.slane %v449_v15, 1  ;;  %v488_v20 = vrot.slane %v484_v16, 1 }
 0x2de   :  { %v454_v4 = vrot.slane %v450_v17, 1  ;;  %v489_v3 = vrot.slane %v485_v18, 1 }
 0x2df   :  { %v457_v22 = vsub.f32 %v436_v13, %v453_v19  ;;  %v492_v23 = vsub.f32 %v449_v15, %v488_v20 }
 0x2e0   :  { %v458_v24 = vsub.f32 %v437_v14, %v454_v4  ;;  %v493_v25 = vsub.f32 %v450_v17, %v489_v3 }
 0x2e1   :  { %v460_v26 = vmul.f32 %v459_v21, %v457_v22  ;;  %v494_v27 = vmul.f32 %v492_v23, %v459_v21 }
 0x2e2   :  { %v461_v28 = vmul.f32 %v459_v21, %v458_v24  ;;  %v495_v29 = vmul.f32 %v493_v25, %v459_v21 }
 0x2e4   :  { %v464_v30 = vcombine.low %v460_v26, %v461_v28  ;;  %v498_v31 = vcombine.low %v494_v27, %v495_v29 }
 0x2e6   :  { %v471_v32 = vrot.slane %v464_v30, %v698_v12  ;;  %v505_v33 = vrot.slane %v498_v31, %v698_v12 }
 0x2e8   :  { %v473_v34 = vadd.f32 %v471_v32, %v689_v9  ;;  %v507_v35 = vadd.f32 %v505_v33, %v689_v9 }
 0x2ea   :  { %v512_v36 = vrot.slane %v473_v34, %v441_v62  ;;  %v516_v37 = vrot.slane %v473_v34, %v445_v0  ;;  %v523_v38 = vrot.slane %v507_v35, %v476_v63  ;;  %v527_v39 = vrot.slane %v507_v35, %v480_v1 }
 0x2ec   :  { %v537_v42 = vsel %vm536_vm3, %v512_v36, %v523_v38  ;;  %v538_v43 = vsel %vm536_vm3, %v516_v37, %v527_v39 }
 0x2ed   :  { %v539_v44 = vsel %vm83_vm0, %v537_v42, %v532_v40  ;;  %v540_v12 = vsel %vm83_vm0, %v538_v43, %v533_v41 }
 0x2ee   :  { %541 = vst [vmem:[#allocation4] sm:$0x1f] %v539_v44  ;;  %542 = vst [vmem:[#allocation4 + $0x8] sm:$0x1f] %v540_v12 }
 0x2ef   :  { %609 = shalt.err (!%p606_p4)
}
 0x2f0   :  { %s610_s24 = scalar_lea.hbm %s803_s9, 256 }
 0x2f1   :  { %p611_p5 = scmp.ne.s32.totalorder %s803_s9, %s610_s24  ;;  %p614_p6 = scmp.lt.u32.totalorder %s610_s24, %s803_s9 }
 0x2f3   :  { %p616_p7 = pnand %p614_p6, %p611_p5 }
 0x2f5   :  { %619 = shalt.err (!%p616_p7)
}
 0x2f6   :  { %552 = dma.vmem_to_hbm [thread:$0]  %s550_s21, 256, %s803_s9, [#allocation5]  }
 0x2f7   :  { %620 = dma.done.wait [#allocation5], 256  }
 0x2f8   :  { %621 = vsyncadd [#allocation5], 4294967040 }
 0x2f9   :  { %556 = vsyncpa [#allocation5], 1 }

</bundles_post_ra>
